<compile_context>
chip_gen: v6e
topology: v6e:2x2x1
jax: 0.10.0
libtpu: 0.0.40
codegen_flags: <defaults>
</compile_context>

<pallas_src>
import functools

import jax
import jax.numpy as jnp
from jax import lax
from jax.experimental import pallas as pl
from jax.experimental.pallas import tpu as pltpu

_VMEM_LIMIT = 48 * 1024 * 1024  # <= v7x's 64 MiB physical VMEM, plenty on v5e/v6e


def _round_up(x, m):
    return (x + m - 1) // m * m


def _pad2d(x, rows, cols):
    return jnp.pad(x, ((0, rows - x.shape[0]), (0, cols - x.shape[1])))


def _plan(n):
    """Pick (n_pad, tm, tk): pad N up to the tile instead of shrinking the tile."""
    n128 = _round_up(n, 128)
    if n128 <= 512:
        return n128, n128, n128           # whole graph in one tile per axis
    n_pad = _round_up(n128, 512)
    tm = 512                              # row tile (grid i axis, megacore-parallel)
    if n_pad % 2048 == 0:
        tk = 2048                         # big A row-chunks: fewer grid steps,
    elif n_pad % 1024 == 0:               # better HBM streaming efficiency
        tk = 1024
    else:
        tk = 512
    return n_pad, tm, tk


# --------------------------- kernel 1: per-node projection ---------------------------
# One fused matmul  X @ [W_l | W_r]  -> split into P (neighbor term, bf16 matmul
# input) and S (self term + bias, f32 since it feeds the f32 accumulator).
def _project_kernel(x_ref, w_ref, b_ref, p_ref, s_ref, *, h_pad):
    ps = jnp.dot(x_ref[...], w_ref[...], preferred_element_type=jnp.float32)
    p_ref[...] = ps[:, :h_pad].astype(p_ref.dtype)
    s_ref[...] = (ps[:, h_pad:] + b_ref[...]).astype(s_ref.dtype)


def project(x, w_cat, b, *, tm):
    n_pad, f_pad = x.shape
    h2 = w_cat.shape[1]
    h_pad = h2 // 2
    flops = 2 * n_pad * f_pad * h2
    bytes_accessed = (n_pad * f_pad * 2 + f_pad * h2 * 2 + h_pad * 4
                      + n_pad * h_pad * (2 + 4))
    kernel = functools.partial(_project_kernel, h_pad=h_pad)
    return pl.pallas_call(
        kernel,
        out_shape=(jax.ShapeDtypeStruct((n_pad, h_pad), jnp.bfloat16),   # P
                   jax.ShapeDtypeStruct((n_pad, h_pad), jnp.float32)),   # S (+bias)
        grid_spec=pltpu.PrefetchScalarGridSpec(
            num_scalar_prefetch=0,
            grid=(n_pad // tm,),
            in_specs=[pl.BlockSpec((tm, f_pad), lambda i: (i, 0)),
                      pl.BlockSpec((f_pad, h2), lambda i: (0, 0)),
                      pl.BlockSpec((1, h_pad), lambda i: (0, 0))],
            out_specs=[pl.BlockSpec((tm, h_pad), lambda i: (i, 0)),
                       pl.BlockSpec((tm, h_pad), lambda i: (i, 0))]),
        compiler_params=pltpu.CompilerParams(
            dimension_semantics=("parallel",),
            vmem_limit_bytes=_VMEM_LIMIT),
        cost_estimate=pl.CostEstimate(flops=flops, transcendentals=0,
                                      bytes_accessed=bytes_accessed),
    )(x, w_cat, b)


# ----------------------- kernel 2: mean aggregation + epilogue -----------------------
def _aggregate_kernel(a_ref, p_ref, s_ref, d_ref, o_ref, acc_ref, *,
                      tk, apply_relu, apply_log_softmax, valid_cols):
    k = pl.program_id(1)

    @pl.when(k == 0)
    def _():
        acc_ref[...] = jnp.zeros_like(acc_ref)

    # int8 0/1 adjacency tile -> bf16 for the MXU.  Storage dtype is chosen for
    # HBM bandwidth (the kernel is HBM-bound on A); the cast is VPU slack work.
    a = a_ref[...].astype(jnp.float32).astype(jnp.bfloat16)
    off = pl.multiple_of(k * tk, tk)
    p = p_ref[pl.ds(off, tk), :]          # P is fully VMEM-resident; slice per k
    acc_ref[...] += jnp.dot(a, p, preferred_element_type=jnp.float32)

    @pl.when(k == pl.num_programs(1) - 1)
    def _():
        # mean scale (exact f32 1/deg) + self term + bias, then activation
        out = acc_ref[...] * d_ref[...] + s_ref[...]
        if apply_relu:
            out = jnp.maximum(out, 0.0)
        if apply_log_softmax:
            # mask padded class columns so they do not affect the normalization
            col = lax.broadcasted_iota(jnp.int32, out.shape, 1)
            out = jnp.where(col < valid_cols, out, -1e30)
            m = jnp.max(out, axis=-1, keepdims=True)
            sh = out - m
            lse = jnp.log(jnp.sum(jnp.exp(sh), axis=-1, keepdims=True))
            out = sh - lse
        o_ref[...] = out.astype(o_ref.dtype)


def aggregate(a, p, s, inv_deg, *, tm, tk, apply_relu, apply_log_softmax,
              valid_cols, out_dtype):
    n_pad = a.shape[0]
    h_pad = p.shape[1]
    out_itemsize = jnp.dtype(out_dtype).itemsize
    flops = 2 * n_pad * n_pad * h_pad
    transcendentals = n_pad * (h_pad + 1) if apply_log_softmax else 0
    bytes_accessed = (n_pad * n_pad * 1          # int8 A, streamed once
                      + n_pad * h_pad * 2        # P, resident (read once)
                      + n_pad * h_pad * 4        # S
                      + n_pad * 4                # inv_deg
                      + n_pad * h_pad * out_itemsize)
    kernel = functools.partial(_aggregate_kernel, tk=tk,
                               apply_relu=apply_relu,
                               apply_log_softmax=apply_log_softmax,
                               valid_cols=valid_cols)
    return pl.pallas_call(
        kernel,
        out_shape=jax.ShapeDtypeStruct((n_pad, h_pad), out_dtype),
        grid_spec=pltpu.PrefetchScalarGridSpec(
            num_scalar_prefetch=0,
            grid=(n_pad // tm, n_pad // tk),
            in_specs=[pl.BlockSpec((tm, tk), lambda i, k: (i, k)),       # A tile
                      pl.BlockSpec((n_pad, h_pad), lambda i, k: (0, 0)),  # P resident
                      pl.BlockSpec((tm, h_pad), lambda i, k: (i, 0)),    # S
                      pl.BlockSpec((tm, 1), lambda i, k: (i, 0))],       # 1/deg
            out_specs=pl.BlockSpec((tm, h_pad), lambda i, k: (i, 0)),
            scratch_shapes=[pltpu.VMEM((tm, h_pad), jnp.float32)]),
        compiler_params=pltpu.CompilerParams(
            dimension_semantics=("parallel", "arbitrary"),
            vmem_limit_bytes=_VMEM_LIMIT),
        cost_estimate=pl.CostEstimate(flops=flops, transcendentals=transcendentals,
                                      bytes_accessed=bytes_accessed),
    )(a, p, s, inv_deg)


def sage_layer(a_i8, inv_deg, x_bf16, w_cat, b, *, apply_relu, apply_log_softmax,
               valid_cols, out_dtype, tm, tk):
    p, s = project(x_bf16, w_cat, b, tm=tm)
    return aggregate(a_i8, p, s, inv_deg, tm=tm, tk=tk,
                     apply_relu=apply_relu, apply_log_softmax=apply_log_softmax,
                     valid_cols=valid_cols, out_dtype=out_dtype)


# ------------------------------------ wrapper ------------------------------------
def build_binary_adj(edge_index, num_nodes, n_pad):
    """Binary (count) adjacency built directly at padded shape in int8, plus
    an exact f32 per-row 1/deg (degree counts duplicate edges, like the ref)."""
    del num_nodes  # indices already < num_nodes; padded rows/cols stay zero
    src, dst = edge_index[0], edge_index[1]
    a = jnp.zeros((n_pad, n_pad), jnp.int8).at[dst, src].add(jnp.int8(1))
    deg = jnp.sum(a, axis=1, dtype=jnp.float32)
    inv_deg = (1.0 / jnp.maximum(deg, 1.0)).reshape(n_pad, 1)
    return a, inv_deg


def graphsage_forward(x, edge_index, params):
    """Eval-mode forward pass of the GraphSage module (layer=2)."""
    n, nfeat = x.shape
    nhid = params["conv1_wl"].shape[1]
    nclass = params["gc2_wl"].shape[1]

    n_pad, tm, tk = _plan(n)
    f_pad = _round_up(nfeat, 128)
    h_pad = _round_up(nhid, 128)
    c_pad = _round_up(nclass, 128)

    a_i8, inv_deg = build_binary_adj(edge_index, n, n_pad)
    x_bf16 = _pad2d(x, n_pad, f_pad).astype(jnp.bfloat16)

    # fused [W_l | W_r] weights (one 2*h-wide MXU pass in the project kernel)
    w1 = jnp.concatenate([_pad2d(params["conv1_wl"], f_pad, h_pad),
                          _pad2d(params["conv1_wr"], f_pad, h_pad)],
                         axis=1).astype(jnp.bfloat16)
    b1 = _pad2d(params["conv1_b"], 1, h_pad).astype(jnp.float32)
    w2 = jnp.concatenate([_pad2d(params["gc2_wl"], h_pad, c_pad),
                          _pad2d(params["gc2_wr"], h_pad, c_pad)],
                         axis=1).astype(jnp.bfloat16)
    b2 = _pad2d(params["gc2_b"], 1, c_pad).astype(jnp.float32)

    # conv1 + relu (+ dropout: identity in eval mode); hidden activations kept bf16
    h = sage_layer(a_i8, inv_deg, x_bf16, w1, b1,
                   apply_relu=True, apply_log_softmax=False,
                   valid_cols=nhid, out_dtype=jnp.bfloat16, tm=tm, tk=tk)
    # gc2 + log_softmax(dim=1)
    out = sage_layer(a_i8, inv_deg, h, w2, b2,
                     apply_relu=False, apply_log_softmax=True,
                     valid_cols=nclass, out_dtype=jnp.float32, tm=tm, tk=tk)
    return out[:n, :nclass]


def reference_forward(x, edge_index, params):
    src, dst = edge_index[0], edge_index[1]
    n = x.shape[0]
    a = jnp.zeros((n, n), jnp.float32).at[dst, src].add(1.0)
    deg = jnp.sum(a, axis=1, keepdims=True)
    a = a / jnp.maximum(deg, 1.0)
    h = jnp.maximum(a @ (x @ params["conv1_wl"]) + x @ params["conv1_wr"]
                    + params["conv1_b"], 0.0)
    z = a @ (h @ params["gc2_wl"]) + h @ params["gc2_wr"] + params["gc2_b"]
    return jax.nn.log_softmax(z, axis=1)


def init_params(key, nfeat, nhid, nclass):
    ks = jax.random.split(key, 4)

    def glorot(k, fan_in, fan_out):
        lim = (6.0 / (fan_in + fan_out)) ** 0.5
        return jax.random.uniform(k, (fan_in, fan_out), jnp.float32, -lim, lim)

    return {
        "conv1_wl": glorot(ks[0], nfeat, nhid),
        "conv1_wr": glorot(ks[1], nfeat, nhid),
        "conv1_b": jnp.zeros((1, nhid), jnp.float32),
        "gc2_wl": glorot(ks[2], nhid, nclass),
        "gc2_wr": glorot(ks[3], nhid, nclass),
        "gc2_b": jnp.zeros((1, nclass), jnp.float32),
    }


if __name__ == "__main__":
    key = jax.random.PRNGKey(0)
    k_x, k_e, k_p = jax.random.split(key, 3)

    num_nodes, nfeat, nhid, nclass = 16, 16, 32, 8
    x = jax.random.normal(k_x, (num_nodes, nfeat), jnp.float32)

    # deterministic small graph: a ring plus a few random edges (src, dst)
    ring_src = jnp.arange(num_nodes, dtype=jnp.int32)
    ring_dst = (ring_src + 1) % num_nodes
    extra_src = jax.random.randint(k_e, (8,), 0, num_nodes, dtype=jnp.int32)
    extra_dst = jax.random.randint(jax.random.fold_in(k_e, 1), (8,), 0, num_nodes,
                                   dtype=jnp.int32)
    edge_index = jnp.stack([jnp.concatenate([ring_src, extra_src]),
                            jnp.concatenate([ring_dst, extra_dst])])

    params = init_params(k_p, nfeat, nhid, nclass)

    out = graphsage_forward(x, edge_index, params)
    jax.block_until_ready(out)

    assert out.shape == (num_nodes, nclass)
    # log_softmax rows must exponentiate-sum to 1
    assert jnp.allclose(jnp.sum(jnp.exp(out), axis=1), 1.0, atol=1e-3)
    # comparison against an f32 pure-JAX reference (kernel uses bf16 X/W/P, but the
    # adjacency + 1/deg path is now exact, so the error budget is bf16-matmul only)
    ref = reference_forward(x, edge_index, params)
    assert jnp.max(jnp.abs(out - ref)) < 0.15
    print("KERNEL_OK")
</pallas_src>

<mosaic_0001>
module attributes {stable_mosaic.version = 11 : i64} {
  func.func @_project_kernel(%arg0: i32, %arg1: memref<128x128xbf16, #tpu.memory_space<vmem>>, %arg2: memref<128x256xbf16, #tpu.memory_space<vmem>>, %arg3: memref<1x128xf32, #tpu.memory_space<vmem>>, %arg4: memref<128x128xbf16, #tpu.memory_space<vmem>>, %arg5: memref<128x128xf32, #tpu.memory_space<vmem>>) attributes {dimension_semantics = [#tpu.dimension_semantics<parallel>], iteration_bounds = array<i64: 1>, scalar_prefetch = 0 : i64, scratch_operands = 0 : i64, tpu.core_type = #tpu.core_type<tc>, window_params = [{transform_indices = @transform_0, window_bounds = array<i64: 128, 128>}, {pipeline_mode = #tpu.pipeline_mode<synchronous>, transform_indices = @transform_1, window_bounds = array<i64: 128, 256>}, {pipeline_mode = #tpu.pipeline_mode<synchronous>, transform_indices = @transform_2, window_bounds = array<i64: 1, 128>}, {transform_indices = @transform_3, window_bounds = array<i64: 128, 128>}, {transform_indices = @transform_4, window_bounds = array<i64: 128, 128>}]} {
    %c0 = arith.constant 0 : index
    %c0_0 = arith.constant 0 : index
    %0 = vector.load %arg1[%c0, %c0_0] : memref<128x128xbf16, #tpu.memory_space<vmem>>, vector<128x128xbf16>
    %c0_1 = arith.constant 0 : index
    %c0_2 = arith.constant 0 : index
    %1 = vector.load %arg2[%c0_1, %c0_2] : memref<128x256xbf16, #tpu.memory_space<vmem>>, vector<128x256xbf16>
    %cst = arith.constant dense<0.000000e+00> : vector<128x256xf32>
    %2 = tpu.matmul %0, %1, %cst {dimension_numbers = #tpu.dot_dimension_numbers<[1], [0], [0], [1], [0, 0, 1, 1], [], []>} : vector<128x128xbf16>, vector<128x256xbf16>, vector<128x256xf32> -> vector<128x256xf32>
    %3 = vector.extract_strided_slice %2 {offsets = [0, 0], sizes = [128, 128], strides = [1, 1]} : vector<128x256xf32> to vector<128x128xf32>
    %4 = arith.truncf %3 : vector<128x128xf32> to vector<128x128xbf16>
    %c0_3 = arith.constant 0 : index
    %c0_4 = arith.constant 0 : index
    %5 = vector.load %arg4[%c0_3, %c0_4] : memref<128x128xbf16, #tpu.memory_space<vmem>>, vector<128x128xbf16>
    tpu.vector_store %arg4[%c0_3, %c0_4], %4 {strides = array<i32>} : memref<128x128xbf16, #tpu.memory_space<vmem>>, vector<128x128xbf16>,
    %6 = vector.extract_strided_slice %2 {offsets = [0, 128], sizes = [128, 128], strides = [1, 1]} : vector<128x256xf32> to vector<128x128xf32>
    %c0_5 = arith.constant 0 : index
    %c0_6 = arith.constant 0 : index
    %7 = vector.load %arg3[%c0_5, %c0_6] : memref<1x128xf32, #tpu.memory_space<vmem>>, vector<1x128xf32>
    %8 = vector.broadcast %7 : vector<1x128xf32> to vector<128x128xf32>
    %9 = arith.addf %6, %8 : vector<128x128xf32>
    %c0_7 = arith.constant 0 : index
    %c0_8 = arith.constant 0 : index
    %10 = vector.load %arg5[%c0_7, %c0_8] : memref<128x128xf32, #tpu.memory_space<vmem>>, vector<128x128xf32>
    tpu.vector_store %arg5[%c0_7, %c0_8], %9 {strides = array<i32>} : memref<128x128xf32, #tpu.memory_space<vmem>>, vector<128x128xf32>,
    return
  }
  func.func @transform_0(%arg0: i32) -> (i32, i32) {
    %c0_i32 = arith.constant 0 : i32
    %c0_i32_0 = arith.constant 0 : i32
    return %arg0, %c0_i32 : i32, i32
  }
  func.func @transform_1(%arg0: i32) -> (i32, i32) {
    %c0_i32 = arith.constant 0 : i32
    %c0_i32_0 = arith.constant 0 : i32
    %c0_i32_1 = arith.constant 0 : i32
    return %c0_i32, %c0_i32_0 : i32, i32
  }
  func.func @transform_2(%arg0: i32) -> (i32, i32) {
    %c0_i32 = arith.constant 0 : i32
    %c0_i32_0 = arith.constant 0 : i32
    %c0_i32_1 = arith.constant 0 : i32
    return %c0_i32, %c0_i32_0 : i32, i32
  }
  func.func @transform_3(%arg0: i32) -> (i32, i32) {
    %c0_i32 = arith.constant 0 : i32
    %c0_i32_0 = arith.constant 0 : i32
    return %arg0, %c0_i32 : i32, i32
  }
  func.func @transform_4(%arg0: i32) -> (i32, i32) {
    %c0_i32 = arith.constant 0 : i32
    %c0_i32_0 = arith.constant 0 : i32
    return %arg0, %c0_i32 : i32, i32
  }
}

</mosaic_0001>

<bundles_post_ra>
// kernel: tpu_custom_call.1
= control target key start
LH: loop header
LB: loop body
LE: loop exit
PB: predicated region body
PF: predicated region fallthrough
CT: control target
= control target key end

     0   :  { %10 = vsyncpa [#allocation3], 0  ;;  %s809_s0 = inlined_call_operand.hbm [shape: bf16[128,128], index: 0, kind: input, shape index: {}]   ;;  %s810_s1 = inlined_call_operand.hbm [shape: bf16[128,256], index: 1, kind: input, shape index: {}]   ;;  %s811_s2 = inlined_call_operand.vmem [shape: f32[1,128], index: 2, kind: input, shape index: {}]   ;;  %s812_s3 = inlined_call_operand.hbm [shape: bf16[128,128], index: 3, kind: output, shape index: {0}]   ;;  %s813_s4 = inlined_call_operand.hbm [shape: f32[128,128], index: 4, kind: output, shape index: {1}]  }
   0x1   :  { %11 = vsyncpa [#allocation6], 0 }
   0x2   :  { %12 = vsyncpa [#allocation4], 0 }
   0x3   :  { %13 = vsyncpa [#allocation9], 0  ;;  %s722_s15 = smov [#allocation2]  }
   0x4   :  { %s19_s16 = sshll.u32 %s722_s15, 4  ;;  %s20_s16 = int_to_ptr.vmem [resolvable:$true] %s19_s16 }
   0x5   :  { %s642_s17 = scalar_lea.vmem %s20_s16, 1024  ;;  %p647_p1 = scmp.lt.s32.totalorder %s20_s16, %s20_s16 }
   0x6   :  { %p643_p0 = scmp.ne.s32.totalorder %s20_s16, %s642_s17  ;;  %p648_p2 = scmp.lt.s32.totalorder %s642_s17, %s642_s17 }
   0x8   :  { %p649_p3 = por %p648_p2, %p647_p1 }
   0xa   :  { %p650_p4 = pnand %p649_p3, %p643_p0 }
   0xc   :  { %653 = shalt.err (!%p650_p4)
}
   0xd   :  { %s723_s18 = smov 64   ;;  %s724_s19 = smov 4  }
   0xe   :  { %25 = dma.hbm_to_vmem [thread:$0]  %s809_s0, 1024, %s20_s16, [#allocation3], %s723_s18, %s723_s18, %s724_s19  }
   0xf   :  { %s725_s22 = smov [#allocation5]  }
  0x10   :  { %s31_s23 = sshll.u32 %s725_s22, 4  ;;  %s32_s23 = int_to_ptr.vmem [resolvable:$true] %s31_s23 }
  0x11   :  { %s662_s24 = scalar_lea.vmem %s32_s23, 2048  ;;  %p667_p6 = scmp.lt.s32.totalorder %s32_s23, %s32_s23 }
  0x12   :  { %p663_p5 = scmp.ne.s32.totalorder %s32_s23, %s662_s24  ;;  %p668_p7 = scmp.lt.s32.totalorder %s662_s24, %s662_s24 }
  0x14   :  { %p669_p8 = por %p668_p7, %p667_p6 }
  0x16   :  { %p670_p9 = pnand %p669_p8, %p663_p5 }
  0x18   :  { %673 = shalt.err (!%p670_p9)
}
  0x19   :  { %s726_s25 = smov 128   ;;  %s727_s26 = smov 8  }
  0x1a   :  { %37 = dma.hbm_to_vmem [thread:$0]  %s810_s1, 2048, %s32_s23, [#allocation6], %s726_s25, %s726_s25, %s727_s26  }
  0x1b   :  { %714 = dma.done.wait [#allocation3], 1024  }
  0x1c   :  { %715 = vsyncadd [#allocation3], 4294966272 }
  0x1d   :  { %716 = dma.done.wait [#allocation6], 2048  }
  0x1e   :  { %717 = vsyncadd [#allocation6], 4294965248  ;;  %v728_v0 = vmov 0   ;;  %v602_v1 = vld [vmem:[#allocation5 + $0x74] ss:$8 sps:$4 sm:$0xff]   ;;  %v626_v17 = vld [vmem:[#allocation2] sm:$0xff]  }
  0x1f   :  { %239 = vmatprep.mubr.bf16.mxu0 %v728_v0  ;;  %279 = vmatprep.mubr.bf16.mxu1 %v728_v0  ;;  %v604_v2 = vld [vmem:[#allocation5 + $0x70] ss:$8 sps:$4 sm:$0xff]   ;;  %v605_v3 = vld [vmem:[#allocation5 + $0x64] ss:$8 sps:$4 sm:$0xff]   ;;  %v607_v4 = vld [vmem:[#allocation5 + $0x60] ss:$8 sps:$4 sm:$0xff]  }
  0x20   :  { %207 = vmatprep.subr.bf16.mxu0 %v602_v1  ;;  %577 = vmatprep.subr.bf16.mxu1 %v602_v1  ;;  %v608_v5 = vld [vmem:[#allocation5 + $0x54] ss:$8 sps:$4 sm:$0xff]   ;;  %v610_v6 = vld [vmem:[#allocation5 + $0x50] ss:$8 sps:$4 sm:$0xff]   ;;  %v611_v7 = vld [vmem:[#allocation5 + $0x44] ss:$8 sps:$4 sm:$0xff]  }
  0x21   :  { %208 = vmatpush1.bf16.msra.mxu0 %v604_v2  ;;  %585 = vmatpush1.bf16.msra.mxu1 %v604_v2  ;;  %v613_v8 = vld [vmem:[#allocation5 + $0x40] ss:$8 sps:$4 sm:$0xff]   ;;  %v614_v9 = vld [vmem:[#allocation5 + $0x34] ss:$8 sps:$4 sm:$0xff]   ;;  %v616_v10 = vld [vmem:[#allocation5 + $0x30] ss:$8 sps:$4 sm:$0xff]  }
  0x22   :  { %209 = vmatprep.subr.bf16.mxu0 %v605_v3  ;;  %578 = vmatprep.subr.bf16.mxu1 %v605_v3  ;;  %v617_v11 = vld [vmem:[#allocation5 + $0x24] ss:$8 sps:$4 sm:$0xff]   ;;  %v619_v12 = vld [vmem:[#allocation5 + $0x20] ss:$8 sps:$4 sm:$0xff]   ;;  %v620_v13 = vld [vmem:[#allocation5 + $0x14] ss:$8 sps:$4 sm:$0xff]  }
  0x23   :  { %v622_v14 = vld [vmem:[#allocation5 + $0x10] ss:$8 sps:$4 sm:$0xff]   ;;  %v623_v15 = vld [vmem:[#allocation5 + $0x4] ss:$8 sps:$4 sm:$0xff]   ;;  %v625_v16 = vld [vmem:[#allocation5] ss:$8 sps:$4 sm:$0xff]  }
  0x24   :  { %v627_v18 = vld [vmem:[#allocation2 + $0x20] sm:$0xff]   ;;  %v628_v19 = vld [vmem:[#allocation2 + $0x8] sm:$0xff]   ;;  %v630_v21 = vld [vmem:[#allocation2 + $0x10] sm:$0xff]   ;;  %s730_s30 = smov [#allocation8]  }
  0x25   :  { %210 = vmatpush1.bf16.msra.mxu0 %v607_v4  ;;  %586 = vmatpush1.bf16.msra.mxu1 %v607_v4  ;;  %v629_v20 = vld [vmem:[#allocation2 + $0x28] sm:$0xff]   ;;  %v631_v22 = vld [vmem:[#allocation2 + $0x30] sm:$0xff]   ;;  %v632_v23 = vld [vmem:[#allocation2 + $0x18] sm:$0xff]   ;;  %s456_s5 = sshll.u32 %s730_s30, 4  ;;  %s457_s5 = int_to_ptr.vmem [resolvable:$true] %s456_s5 }
  0x26   :  { %211 = vmatprep.subr.bf16.mxu0 %v608_v5  ;;  %579 = vmatprep.subr.bf16.mxu1 %v608_v5  ;;  %v633_v24 = vld [vmem:[#allocation2 + $0x38] sm:$0xff]   ;;  %v779_v27 = vld [vmem:[%s811_s2] ss:$0 sm:$0xff]  ;;  %s729_s2 = smov [#allocation7]  }
  0x27   :  { %s444_s29 = sshll.u32 %s729_s2, 4  ;;  %s445_s29 = int_to_ptr.vmem [resolvable:$true] %s444_s29 }
  0x28   :  { %s674_s6 = scalar_lea.vmem %s445_s29, 1024  ;;  %p679_p11 = scmp.lt.s32.totalorder %s445_s29, %s445_s29 }
  0x29   :  { %212 = vmatpush1.bf16.msra.mxu0 %v610_v6  ;;  %587 = vmatpush1.bf16.msra.mxu1 %v610_v6  ;;  %p675_p10 = scmp.ne.s32.totalorder %s445_s29, %s674_s6  ;;  %p680_p12 = scmp.lt.s32.totalorder %s674_s6, %s674_s6 }
  0x2a   :  { %213 = vmatprep.subr.bf16.mxu0 %v611_v7  ;;  %580 = vmatprep.subr.bf16.mxu1 %v611_v7 }
  0x2b   :  { %p681_p13 = por %p680_p12, %p679_p11 }
  0x2d   :  { %214 = vmatpush1.bf16.msra.mxu0 %v613_v8  ;;  %588 = vmatpush1.bf16.msra.mxu1 %v613_v8  ;;  %p682_p0 = pnand %p681_p13, %p675_p10 }
  0x2e   :  { %215 = vmatprep.subr.bf16.mxu0 %v614_v9  ;;  %581 = vmatprep.subr.bf16.mxu1 %v614_v9 }
  0x31   :  { %216 = vmatpush1.bf16.msra.mxu0 %v616_v10  ;;  %589 = vmatpush1.bf16.msra.mxu1 %v616_v10 }
  0x32   :  { %217 = vmatprep.subr.bf16.mxu0 %v617_v11  ;;  %582 = vmatprep.subr.bf16.mxu1 %v617_v11 }
  0x35   :  { %218 = vmatpush1.bf16.msra.mxu0 %v619_v12  ;;  %590 = vmatpush1.bf16.msra.mxu1 %v619_v12 }
  0x36   :  { %219 = vmatprep.subr.bf16.mxu0 %v620_v13  ;;  %583 = vmatprep.subr.bf16.mxu1 %v620_v13 }
  0x39   :  { %220 = vmatpush1.bf16.msra.mxu0 %v622_v14  ;;  %591 = vmatpush1.bf16.msra.mxu1 %v622_v14 }
  0x3a   :  { %221 = vmatprep.subr.bf16.mxu0 %v623_v15  ;;  %584 = vmatprep.subr.bf16.mxu1 %v623_v15 }
  0x3d   :  { %222 = vmatpush1.bf16.msra.mxu0 %v625_v16  ;;  %592 = vmatpush1.bf16.msra.mxu1 %v625_v16 }
  0x40   :  { %240 = vmatmul.mubr.bf16.vlgmr.msra.gmra.mxu0 %v626_v17  ;;  %280 = vmatmul.mubr.bf16.vlgmr.msra.gmra.mxu1 %v627_v18 }
  0x41   :  { %249 = vmatprep.mubr.bf16.mxu0 %v728_v0  ;;  %289 = vmatprep.mubr.bf16.mxu1 %v728_v0 }
  0x48   :  { %250 = vmatmul.mubr.bf16.gmra.mxu0 %v628_v19  ;;  %290 = vmatmul.mubr.bf16.gmra.mxu1 %v629_v20 }
  0x49   :  { %259 = vmatprep.mubr.bf16.mxu0 %v728_v0  ;;  %299 = vmatprep.mubr.bf16.mxu1 %v728_v0 }
  0x50   :  { %260 = vmatmul.mubr.bf16.gmra.mxu0 %v630_v21  ;;  %300 = vmatmul.mubr.bf16.gmra.mxu1 %v631_v22 }
  0x51   :  { %269 = vmatprep.mubr.bf16.mxu0 %v728_v0  ;;  %309 = vmatprep.mubr.bf16.mxu1 %v728_v0 }
  0x58   :  { %270 = vmatmul.mubr.bf16.gmra.mxu0 %v632_v23  ;;  %310 = vmatmul.mubr.bf16.gmra.mxu1 %v633_v24 }
 0x100   :  { %v241_v25 = vpop.f32.mrf.mxu0  ;;  %v281_v26 = vpop.f32.mrf.mxu1 }
 0x102   :  { %v243_v28 = vpop.f32.mrf.mxu0  ;;  %v283_v29 = vpop.f32.mrf.mxu1 }
 0x103   :  { %v407_v30 = vadd.f32 %v779_v27, %v243_v28  ;;  %v415_v31 = vadd.f32 %v779_v27, %v283_v29 }
 0x104   :  { %v245_v32 = vpop.f32.mrf.mxu0  ;;  %v285_v33 = vpop.f32.mrf.mxu1 }
 0x105   :  { %423 = vst [vmem:[#allocation8] sm:$0xff] %v407_v30  ;;  %431 = vst [vmem:[#allocation8 + $0x40] sm:$0xff] %v415_v31  ;;  %v533_v34 = vpack.c.bf16 %v245_v32, %v241_v25  ;;  %v553_v35 = vpack.c.bf16 %v285_v33, %v281_v26 }
 0x106   :  { %v247_v36 = vpop.f32.mrf.mxu0  ;;  %v287_v37 = vpop.f32.mrf.mxu1 }
 0x107   :  { %534 = vst [vmem:[#allocation7] sm:$0xff] %v533_v34   ;;  %573 = vst [vmem:[#allocation7 + $0x20] sm:$0xff] %v553_v35   ;;  %v408_v38 = vadd.f32 %v779_v27, %v247_v36  ;;  %v416_v39 = vadd.f32 %v779_v27, %v287_v37 }
 0x108   :  { %v251_v40 = vpop.f32.mrf.mxu0  ;;  %v291_v41 = vpop.f32.mrf.mxu1 }
 0x109   :  { %424 = vst [vmem:[#allocation8 + $0x8] sm:$0xff] %v408_v38  ;;  %432 = vst [vmem:[#allocation8 + $0x48] sm:$0xff] %v416_v39 }
 0x10a   :  { %v253_v42 = vpop.f32.mrf.mxu0  ;;  %v293_v43 = vpop.f32.mrf.mxu1 }
 0x10b   :  { %v409_v44 = vadd.f32 %v779_v27, %v253_v42  ;;  %v417_v45 = vadd.f32 %v779_v27, %v293_v43 }
 0x10c   :  { %v255_v46 = vpop.f32.mrf.mxu0  ;;  %v295_v47 = vpop.f32.mrf.mxu1 }
 0x10d   :  { %425 = vst [vmem:[#allocation8 + $0x10] sm:$0xff] %v409_v44  ;;  %433 = vst [vmem:[#allocation8 + $0x50] sm:$0xff] %v417_v45  ;;  %v538_v48 = vpack.c.bf16 %v255_v46, %v251_v40  ;;  %v558_v49 = vpack.c.bf16 %v295_v47, %v291_v41 }
 0x10e   :  { %v257_v50 = vpop.f32.mrf.mxu0  ;;  %v297_v51 = vpop.f32.mrf.mxu1 }
 0x10f   :  { %570 = vst [vmem:[#allocation7 + $0x8] sm:$0xff] %v538_v48   ;;  %574 = vst [vmem:[#allocation7 + $0x28] sm:$0xff] %v558_v49   ;;  %v410_v52 = vadd.f32 %v779_v27, %v257_v50  ;;  %v418_v53 = vadd.f32 %v779_v27, %v297_v51 }
 0x110   :  { %v261_v54 = vpop.f32.mrf.mxu0  ;;  %v301_v55 = vpop.f32.mrf.mxu1 }
 0x111   :  { %426 = vst [vmem:[#allocation8 + $0x18] sm:$0xff] %v410_v52  ;;  %434 = vst [vmem:[#allocation8 + $0x58] sm:$0xff] %v418_v53 }
 0x112   :  { %v263_v56 = vpop.f32.mrf.mxu0  ;;  %v303_v57 = vpop.f32.mrf.mxu1 }
 0x113   :  { %v411_v58 = vadd.f32 %v779_v27, %v263_v56  ;;  %v419_v59 = vadd.f32 %v779_v27, %v303_v57 }
 0x114   :  { %v265_v60 = vpop.f32.mrf.mxu0  ;;  %v305_v61 = vpop.f32.mrf.mxu1 }
 0x115   :  { %427 = vst [vmem:[#allocation8 + $0x20] sm:$0xff] %v411_v58  ;;  %435 = vst [vmem:[#allocation8 + $0x60] sm:$0xff] %v419_v59  ;;  %v543_v62 = vpack.c.bf16 %v265_v60, %v261_v54  ;;  %v563_v63 = vpack.c.bf16 %v305_v61, %v301_v55 }
 0x116   :  { %v267_v0 = vpop.f32.mrf.mxu0  ;;  %v307_v1 = vpop.f32.mrf.mxu1 }
 0x117   :  { %571 = vst [vmem:[#allocation7 + $0x10] sm:$0xff] %v543_v62   ;;  %575 = vst [vmem:[#allocation7 + $0x30] sm:$0xff] %v563_v63   ;;  %v412_v2 = vadd.f32 %v779_v27, %v267_v0  ;;  %v420_v3 = vadd.f32 %v779_v27, %v307_v1 }
 0x118   :  { %v271_v4 = vpop.f32.mrf.mxu0  ;;  %v311_v5 = vpop.f32.mrf.mxu1 }
 0x119   :  { %428 = vst [vmem:[#allocation8 + $0x28] sm:$0xff] %v412_v2  ;;  %436 = vst [vmem:[#allocation8 + $0x68] sm:$0xff] %v420_v3 }
 0x11a   :  { %v273_v6 = vpop.f32.mrf.mxu0  ;;  %v313_v7 = vpop.f32.mrf.mxu1 }
 0x11b   :  { %v413_v8 = vadd.f32 %v779_v27, %v273_v6  ;;  %v421_v9 = vadd.f32 %v779_v27, %v313_v7 }
 0x11c   :  { %v275_v10 = vpop.f32.mrf.mxu0  ;;  %v315_v11 = vpop.f32.mrf.mxu1 }
 0x11d   :  { %429 = vst [vmem:[#allocation8 + $0x30] sm:$0xff] %v413_v8  ;;  %437 = vst [vmem:[#allocation8 + $0x70] sm:$0xff] %v421_v9  ;;  %v548_v12 = vpack.c.bf16 %v275_v10, %v271_v4  ;;  %v568_v13 = vpack.c.bf16 %v315_v11, %v311_v5 }
 0x11e   :  { %v277_v14 = vpop.f32.mrf.mxu0  ;;  %v317_v15 = vpop.f32.mrf.mxu1 }
 0x11f   :  { %572 = vst [vmem:[#allocation7 + $0x18] sm:$0xff] %v548_v12   ;;  %576 = vst [vmem:[#allocation7 + $0x38] sm:$0xff] %v568_v13   ;;  %v414_v16 = vadd.f32 %v779_v27, %v277_v14  ;;  %v422_v17 = vadd.f32 %v779_v27, %v317_v15 }
 0x120   :  { %685 = shalt.err (!%p682_p0)
}
 0x121   :  { %450 = dma.vmem_to_hbm [thread:$0]  %s445_s29, 1024, %s812_s3, [#allocation4], %s723_s18, %s723_s18, %s724_s19   ;;  %430 = vst [vmem:[#allocation8 + $0x38] sm:$0xff] %v414_v16  ;;  %438 = vst [vmem:[#allocation8 + $0x78] sm:$0xff] %v422_v17 }
 0x122   :  { %s694_s9 = scalar_lea.vmem %s457_s5, 2048  ;;  %p699_p2 = scmp.lt.s32.totalorder %s457_s5, %s457_s5 }
 0x123   :  { %p695_p1 = scmp.ne.s32.totalorder %s457_s5, %s694_s9  ;;  %p700_p3 = scmp.lt.s32.totalorder %s694_s9, %s694_s9 }
 0x125   :  { %p701_p4 = por %p700_p3, %p699_p2 }
 0x127   :  { %p702_p5 = pnand %p701_p4, %p695_p1 }
 0x129   :  { %705 = shalt.err (!%p702_p5)
}
 0x12a   :  { %462 = dma.vmem_to_hbm [thread:$0]  %s457_s5, 2048, %s813_s4, [#allocation9], %s726_s25, %s726_s25, %s727_s26  }
 0x12b   :  { %718 = dma.done.wait [#allocation4], 1024  }
 0x12c   :  { %719 = vsyncadd [#allocation4], 4294966272 }
 0x12d   :  { %720 = dma.done.wait [#allocation9], 2048  }
 0x12e   :  { %721 = vsyncadd [#allocation9], 4294965248 }
 0x12f   :  { %469 = vsyncpa [#allocation3], 1 }
 0x130   :  { %470 = vsyncpa [#allocation6], 1 }
 0x131   :  { %471 = vsyncpa [#allocation4], 1 }
 0x132   :  { %472 = vsyncpa [#allocation9], 1 }

</bundles_post_ra>
